<compile_context>
chip_gen: v7x
topology: tpu7x:2x2x1
jax: 0.10.0
libtpu: 0.0.40
codegen_flags: <defaults>
</compile_context>

<pallas_src>
import functools
import math

import jax
import jax.numpy as jnp
from jax import lax
from jax.experimental import pallas as pl
from jax.experimental.pallas import tpu as pltpu


# ----------------------------------------------------------------------------
# Fused kernel: projections + per-head attention + fc_out, one batch element.
#   v/k/q refs : (L, E)  lane-dense activations
#   m ref      : (Lq, Lk) int8 (0 = masked), broadcast over heads
#   wv/wk/wq   : (E, E)  block-diagonal, already transposed (x @ W form)
#   wfc        : (E, E)  fc_out weight, already transposed
#   bfc        : (1, E)  fc_out bias
#   o ref      : (Lq, E)
# ----------------------------------------------------------------------------
def _self_attention_kernel(v_ref, k_ref, q_ref, m_ref,
                           wv_ref, wk_ref, wq_ref, wfc_ref, bfc_ref,
                           o_ref, *, heads, head_dim, inv_sqrt_d, masked_fill,
                           mxu_dtype):
    def mm(a, b):
        return jnp.dot(a.astype(mxu_dtype), b.astype(mxu_dtype),
                       preferred_element_type=jnp.float32)

    # Hoisted, lane-dense projections (weights pre-transposed / block-diag).
    # Scale is folded into the (Lq, E) q projection, not the (Lq, Lk) energy.
    qp = mm(q_ref[...], wq_ref[...]) * jnp.float32(inv_sqrt_d)   # (Lq, E)
    kp = mm(k_ref[...], wk_ref[...])                             # (Lk, E)
    vp = mm(v_ref[...], wv_ref[...])                             # (Lv, E)

    mask_is_zero = m_ref[...].astype(jnp.int32) == 0             # (Lq, Lk)

    head_outs = []
    for h in range(heads):                      # static unroll over heads
        sl = slice(h * head_dim, (h + 1) * head_dim)
        qh = qp[:, sl].astype(mxu_dtype)        # (Lq, D)
        kh = kp[:, sl].astype(mxu_dtype)        # (Lk, D)
        vh = vp[:, sl].astype(mxu_dtype)        # (Lv, D)

        # energy[q, k] = sum_d qh[q, d] * kh[k, d]  (no transposed operand)
        energy = lax.dot_general(
            qh, kh,
            dimension_numbers=(((1,), (1,)), ((), ())),
            preferred_element_type=jnp.float32)                  # (Lq, Lk)

        energy = jnp.where(mask_is_zero, jnp.float32(masked_fill), energy)

        # numerically-stable softmax along keys; kept in f32 (VPU/EUP)
        energy = energy - jnp.max(energy, axis=-1, keepdims=True)
        p = jnp.exp(energy)
        denom = jnp.sum(p, axis=-1, keepdims=True)
        attn = p * pl.reciprocal(denom, approx=True)

        head_outs.append(
            jnp.dot(attn.astype(mxu_dtype), vh,
                    preferred_element_type=jnp.float32))         # (Lq, D)

    concat = jnp.concatenate(head_outs, axis=-1)                 # (Lq, E)

    # fused fc_out epilogue: lane-dense (Lq, E) @ (E, E) + bias
    out = jnp.dot(concat.astype(mxu_dtype), wfc_ref[...],
                  preferred_element_type=jnp.float32) + bfc_ref[...]
    o_ref[...] = out.astype(o_ref.dtype)


def self_attention_forward(values, keys, query, mask, params, heads,
                           *, mxu_dtype=jnp.float32):
    """Pallas implementation of SelfAttention.forward."""
    wq, wk, wv, w_fc, b_fc = params
    N, Lq, E = query.shape
    Lk = keys.shape[1]
    Lv = values.shape[1]
    D = E // heads
    assert D * heads == E
    sqrt_d = math.sqrt(E)  # matches the module: sqrt(embed_size), not head_dim

    # One-time weight plumbing (outside the hot loop):
    #   block-diagonal = apply the shared (D, D) weight to every head of a
    #   lane-dense (L, E) activation with a single (E, E) matmul.
    eye_h = jnp.eye(heads, dtype=w_fc.dtype)
    wq_bd = jnp.kron(eye_h, wq.T).astype(mxu_dtype)   # (E, E)
    wk_bd = jnp.kron(eye_h, wk.T).astype(mxu_dtype)
    wv_bd = jnp.kron(eye_h, wv.T).astype(mxu_dtype)
    w_fc_t = w_fc.T.astype(mxu_dtype)                 # (E, E) pre-transposed
    b_fc2 = b_fc.reshape(1, E).astype(jnp.float32)

    mask_i8 = mask.astype(jnp.int8)                   # 4x less DMA than int32

    kernel = functools.partial(
        _self_attention_kernel,
        heads=heads, head_dim=D,
        inv_sqrt_d=1.0 / sqrt_d,
        masked_fill=-1e20 / sqrt_d,   # torch order: masked_fill(-1e20) then /sqrt_d
        mxu_dtype=mxu_dtype)

    return pl.pallas_call(
        kernel,
        out_shape=jax.ShapeDtypeStruct((N, Lq, E), jnp.float32),
        grid=(N,),
        in_specs=[
            pl.BlockSpec((None, Lv, E), lambda n: (n, 0, 0)),            # values
            pl.BlockSpec((None, Lk, E), lambda n: (n, 0, 0)),            # keys
            pl.BlockSpec((None, Lq, E), lambda n: (n, 0, 0)),            # query
            pl.BlockSpec((None, None, Lq, Lk), lambda n: (n, 0, 0, 0)),  # mask
            pl.BlockSpec((E, E), lambda n: (0, 0)),                      # Wv bd
            pl.BlockSpec((E, E), lambda n: (0, 0)),                      # Wk bd
            pl.BlockSpec((E, E), lambda n: (0, 0)),                      # Wq bd
            pl.BlockSpec((E, E), lambda n: (0, 0)),                      # fc W^T
            pl.BlockSpec((1, E), lambda n: (0, 0)),                      # fc bias
        ],
        out_specs=pl.BlockSpec((None, Lq, E), lambda n: (n, 0, 0)),
        compiler_params=pltpu.CompilerParams(
            dimension_semantics=("parallel",)),
    )(values, keys, query, mask_i8, wv_bd, wk_bd, wq_bd, w_fc_t, b_fc2)


# ----------------------------------------------------------------------------
# pure-JAX reference (mirrors the torch forward exactly) for verification
# ----------------------------------------------------------------------------
def _reference_forward(values, keys, query, mask, params, heads):
    wq, wk, wv, w_fc, b_fc = params
    N, Lq, E = query.shape
    Lk, Lv = keys.shape[1], values.shape[1]
    D = E // heads
    sqrt_d = math.sqrt(E)

    v = values.reshape(N, Lv, heads, D) @ wv.T
    k = keys.reshape(N, Lk, heads, D) @ wk.T
    q = query.reshape(N, Lq, heads, D) @ wq.T

    energy = jnp.einsum("nqhd,nkhd->nhqk", q, k)
    energy = jnp.where(mask == 0, jnp.float32(-1e20), energy)
    attn = jax.nn.softmax(energy / sqrt_d, axis=-1)
    out = jnp.einsum("nhqk,nkhd->nqhd", attn, v).reshape(N, Lq, heads * D)
    return out @ w_fc.T + b_fc


if __name__ == "__main__":
    N, L, E, H = 2, 8, 32, 4
    D = E // H

    key = jax.random.PRNGKey(0)
    kv, kk, kq, kwq, kwk, kwv, kwf, kbf, km = jax.random.split(key, 9)

    values = jax.random.normal(kv, (N, L, E), jnp.float32)
    keys_ = jax.random.normal(kk, (N, L, E), jnp.float32)
    query = jax.random.normal(kq, (N, L, E), jnp.float32)
    mask = (jax.random.uniform(km, (N, 1, L, L)) > 0.3).astype(jnp.int32)

    # deterministic synthetic parameters (torch nn.Linear layout: (out, in))
    wq = jax.random.normal(kwq, (D, D), jnp.float32) * 0.1
    wk = jax.random.normal(kwk, (D, D), jnp.float32) * 0.1
    wv = jax.random.normal(kwv, (D, D), jnp.float32) * 0.1
    w_fc = jax.random.normal(kwf, (E, E), jnp.float32) * 0.1
    b_fc = jax.random.normal(kbf, (E,), jnp.float32) * 0.1
    params = (wq, wk, wv, w_fc, b_fc)

    ref = _reference_forward(values, keys_, query, mask, params, H)

    # f32 MXU operands (tight check; approx reciprocal adds ~1e-4-level error)
    out_f32 = jax.block_until_ready(
        self_attention_forward(values, keys_, query, mask, params, H,
                               mxu_dtype=jnp.float32))
    assert out_f32.shape == (N, L, E)
    assert jnp.allclose(out_f32, ref, rtol=5e-3, atol=5e-3), \
        float(jnp.max(jnp.abs(out_f32 - ref)))

    # bf16 MXU operands / f32 accumulation (v6e / v7x fast path; looser check)
    out_bf16 = jax.block_until_ready(
        self_attention_forward(values, keys_, query, mask, params, H,
                               mxu_dtype=jnp.bfloat16))
    assert out_bf16.shape == (N, L, E)
    assert jnp.allclose(out_bf16, ref, rtol=5e-2, atol=5e-2), \
        float(jnp.max(jnp.abs(out_bf16 - ref)))

    print("KERNEL_OK")
</pallas_src>

<mosaic_0001>
module attributes {stable_mosaic.version = 11 : i64} {
  func.func @_self_attention_kernel(%arg0: i32, %arg1: memref<1x8x32xf32, #tpu.memory_space<vmem>>, %arg2: memref<1x8x32xf32, #tpu.memory_space<vmem>>, %arg3: memref<1x8x32xf32, #tpu.memory_space<vmem>>, %arg4: memref<1x1x8x8xi8, #tpu.memory_space<vmem>>, %arg5: memref<32x32xf32, #tpu.memory_space<vmem>>, %arg6: memref<32x32xf32, #tpu.memory_space<vmem>>, %arg7: memref<32x32xf32, #tpu.memory_space<vmem>>, %arg8: memref<32x32xf32, #tpu.memory_space<vmem>>, %arg9: memref<1x32xf32, #tpu.memory_space<vmem>>, %arg10: memref<1x8x32xf32, #tpu.memory_space<vmem>>) attributes {dimension_semantics = [#tpu.dimension_semantics<parallel>], iteration_bounds = array<i64: 2>, scalar_prefetch = 0 : i64, scratch_operands = 0 : i64, tpu.core_type = #tpu.core_type<tc>, window_params = [{transform_indices = @transform_0, window_bounds = array<i64: 1, 8, 32>}, {transform_indices = @transform_1, window_bounds = array<i64: 1, 8, 32>}, {transform_indices = @transform_2, window_bounds = array<i64: 1, 8, 32>}, {transform_indices = @transform_3, window_bounds = array<i64: 1, 1, 8, 8>}, {pipeline_mode = #tpu.pipeline_mode<synchronous>, transform_indices = @transform_4, window_bounds = array<i64: 32, 32>}, {pipeline_mode = #tpu.pipeline_mode<synchronous>, transform_indices = @transform_5, window_bounds = array<i64: 32, 32>}, {pipeline_mode = #tpu.pipeline_mode<synchronous>, transform_indices = @transform_6, window_bounds = array<i64: 32, 32>}, {pipeline_mode = #tpu.pipeline_mode<synchronous>, transform_indices = @transform_7, window_bounds = array<i64: 32, 32>}, {pipeline_mode = #tpu.pipeline_mode<synchronous>, transform_indices = @transform_8, window_bounds = array<i64: 1, 32>}, {transform_indices = @transform_9, window_bounds = array<i64: 1, 8, 32>}]} {
    %c0 = arith.constant 0 : index
    %c0_0 = arith.constant 0 : index
    %c0_1 = arith.constant 0 : index
    %0 = vector.load %arg3[%c0, %c0_0, %c0_1] : memref<1x8x32xf32, #tpu.memory_space<vmem>>, vector<1x8x32xf32>
    %1 = vector.shape_cast %0 : vector<1x8x32xf32> to vector<8x32xf32>
    %c0_2 = arith.constant 0 : index
    %c0_3 = arith.constant 0 : index
    %2 = vector.load %arg7[%c0_2, %c0_3] : memref<32x32xf32, #tpu.memory_space<vmem>>, vector<32x32xf32>
    %cst = arith.constant dense<0.000000e+00> : vector<8x32xf32>
    %3 = tpu.matmul %1, %2, %cst {dimension_numbers = #tpu.dot_dimension_numbers<[1], [0], [0], [1], [0, 0, 1, 1], [], []>} : vector<8x32xf32>, vector<32x32xf32>, vector<8x32xf32> -> vector<8x32xf32>
    %cst_4 = arith.constant 0.176776692 : f32
    %4 = vector.broadcast %cst_4 : f32 to vector<8x32xf32>
    %5 = arith.mulf %3, %4 : vector<8x32xf32>
    %c0_5 = arith.constant 0 : index
    %c0_6 = arith.constant 0 : index
    %c0_7 = arith.constant 0 : index
    %6 = vector.load %arg2[%c0_5, %c0_6, %c0_7] : memref<1x8x32xf32, #tpu.memory_space<vmem>>, vector<1x8x32xf32>
    %7 = vector.shape_cast %6 : vector<1x8x32xf32> to vector<8x32xf32>
    %c0_8 = arith.constant 0 : index
    %c0_9 = arith.constant 0 : index
    %8 = vector.load %arg6[%c0_8, %c0_9] : memref<32x32xf32, #tpu.memory_space<vmem>>, vector<32x32xf32>
    %cst_10 = arith.constant dense<0.000000e+00> : vector<8x32xf32>
    %9 = tpu.matmul %7, %8, %cst_10 {dimension_numbers = #tpu.dot_dimension_numbers<[1], [0], [0], [1], [0, 0, 1, 1], [], []>} : vector<8x32xf32>, vector<32x32xf32>, vector<8x32xf32> -> vector<8x32xf32>
    %c0_11 = arith.constant 0 : index
    %c0_12 = arith.constant 0 : index
    %c0_13 = arith.constant 0 : index
    %10 = vector.load %arg1[%c0_11, %c0_12, %c0_13] : memref<1x8x32xf32, #tpu.memory_space<vmem>>, vector<1x8x32xf32>
    %11 = vector.shape_cast %10 : vector<1x8x32xf32> to vector<8x32xf32>
    %c0_14 = arith.constant 0 : index
    %c0_15 = arith.constant 0 : index
    %12 = vector.load %arg5[%c0_14, %c0_15] : memref<32x32xf32, #tpu.memory_space<vmem>>, vector<32x32xf32>
    %cst_16 = arith.constant dense<0.000000e+00> : vector<8x32xf32>
    %13 = tpu.matmul %11, %12, %cst_16 {dimension_numbers = #tpu.dot_dimension_numbers<[1], [0], [0], [1], [0, 0, 1, 1], [], []>} : vector<8x32xf32>, vector<32x32xf32>, vector<8x32xf32> -> vector<8x32xf32>
    %c0_17 = arith.constant 0 : index
    %c0_18 = arith.constant 0 : index
    %c0_19 = arith.constant 0 : index
    %c0_20 = arith.constant 0 : index
    %14 = vector.load %arg4[%c0_17, %c0_18, %c0_19, %c0_20] : memref<1x1x8x8xi8, #tpu.memory_space<vmem>>, vector<1x1x8x8xi8>
    %15 = vector.shape_cast %14 : vector<1x1x8x8xi8> to vector<8x8xi8>
    %16 = arith.extsi %15 : vector<8x8xi8> to vector<8x8xi32>
    %c0_i32 = arith.constant 0 : i32
    %17 = vector.broadcast %c0_i32 : i32 to vector<8x8xi32>
    %18 = arith.cmpi eq, %16, %17 : vector<8x8xi32>
    %19 = vector.extract_strided_slice %5 {offsets = [0, 0], sizes = [8, 8], strides = [1, 1]} : vector<8x32xf32> to vector<8x8xf32>
    %20 = vector.extract_strided_slice %9 {offsets = [0, 0], sizes = [8, 8], strides = [1, 1]} : vector<8x32xf32> to vector<8x8xf32>
    %21 = vector.extract_strided_slice %13 {offsets = [0, 0], sizes = [8, 8], strides = [1, 1]} : vector<8x32xf32> to vector<8x8xf32>
    %cst_21 = arith.constant dense<0.000000e+00> : vector<8x8xf32>
    %22 = tpu.matmul %19, %20, %cst_21 {dimension_numbers = #tpu.dot_dimension_numbers<[1], [1], [0], [0], [0, 0, 1, 0], [], []>} : vector<8x8xf32>, vector<8x8xf32>, vector<8x8xf32> -> vector<8x8xf32>
    %cst_22 = arith.constant -1.76776698E+19 : f32
    %23 = vector.broadcast %cst_22 : f32 to vector<8x8xf32>
    %24 = arith.select %18, %23, %22 : vector<8x8xi1>, vector<8x8xf32>
    %cst_23 = arith.constant dense<0xFF800000> : vector<8xf32>
    %25 = vector.multi_reduction <maximumf>, %24, %cst_23 [1] : vector<8x8xf32> to vector<8xf32>
    %26 = vector.shape_cast %25 : vector<8xf32> to vector<8x1xf32>
    %27 = vector.broadcast %26 : vector<8x1xf32> to vector<8x8xf32>
    %28 = arith.subf %24, %27 : vector<8x8xf32>
    %29 = math.exp %28 : vector<8x8xf32>
    %cst_24 = arith.constant dense<0.000000e+00> : vector<8xf32>
    %30 = vector.multi_reduction <add>, %29, %cst_24 [1] : vector<8x8xf32> to vector<8xf32>
    %31 = vector.shape_cast %30 : vector<8xf32> to vector<8x1xf32>
    %32 = tpu.reciprocal %31 {approx = true} : vector<8x1xf32> -> vector<8x1xf32>
    %33 = vector.broadcast %32 : vector<8x1xf32> to vector<8x8xf32>
    %34 = arith.mulf %29, %33 : vector<8x8xf32>
    %cst_25 = arith.constant dense<0.000000e+00> : vector<8x8xf32>
    %35 = tpu.matmul %34, %21, %cst_25 {dimension_numbers = #tpu.dot_dimension_numbers<[1], [0], [0], [1], [0, 0, 1, 1], [], []>} : vector<8x8xf32>, vector<8x8xf32>, vector<8x8xf32> -> vector<8x8xf32>
    %36 = vector.extract_strided_slice %5 {offsets = [0, 8], sizes = [8, 8], strides = [1, 1]} : vector<8x32xf32> to vector<8x8xf32>
    %37 = vector.extract_strided_slice %9 {offsets = [0, 8], sizes = [8, 8], strides = [1, 1]} : vector<8x32xf32> to vector<8x8xf32>
    %38 = vector.extract_strided_slice %13 {offsets = [0, 8], sizes = [8, 8], strides = [1, 1]} : vector<8x32xf32> to vector<8x8xf32>
    %cst_26 = arith.constant dense<0.000000e+00> : vector<8x8xf32>
    %39 = tpu.matmul %36, %37, %cst_26 {dimension_numbers = #tpu.dot_dimension_numbers<[1], [1], [0], [0], [0, 0, 1, 0], [], []>} : vector<8x8xf32>, vector<8x8xf32>, vector<8x8xf32> -> vector<8x8xf32>
    %cst_27 = arith.constant -1.76776698E+19 : f32
    %40 = vector.broadcast %cst_27 : f32 to vector<8x8xf32>
    %41 = arith.select %18, %40, %39 : vector<8x8xi1>, vector<8x8xf32>
    %cst_28 = arith.constant dense<0xFF800000> : vector<8xf32>
    %42 = vector.multi_reduction <maximumf>, %41, %cst_28 [1] : vector<8x8xf32> to vector<8xf32>
    %43 = vector.shape_cast %42 : vector<8xf32> to vector<8x1xf32>
    %44 = vector.broadcast %43 : vector<8x1xf32> to vector<8x8xf32>
    %45 = arith.subf %41, %44 : vector<8x8xf32>
    %46 = math.exp %45 : vector<8x8xf32>
    %cst_29 = arith.constant dense<0.000000e+00> : vector<8xf32>
    %47 = vector.multi_reduction <add>, %46, %cst_29 [1] : vector<8x8xf32> to vector<8xf32>
    %48 = vector.shape_cast %47 : vector<8xf32> to vector<8x1xf32>
    %49 = tpu.reciprocal %48 {approx = true} : vector<8x1xf32> -> vector<8x1xf32>
    %50 = vector.broadcast %49 : vector<8x1xf32> to vector<8x8xf32>
    %51 = arith.mulf %46, %50 : vector<8x8xf32>
    %cst_30 = arith.constant dense<0.000000e+00> : vector<8x8xf32>
    %52 = tpu.matmul %51, %38, %cst_30 {dimension_numbers = #tpu.dot_dimension_numbers<[1], [0], [0], [1], [0, 0, 1, 1], [], []>} : vector<8x8xf32>, vector<8x8xf32>, vector<8x8xf32> -> vector<8x8xf32>
    %53 = vector.extract_strided_slice %5 {offsets = [0, 16], sizes = [8, 8], strides = [1, 1]} : vector<8x32xf32> to vector<8x8xf32>
    %54 = vector.extract_strided_slice %9 {offsets = [0, 16], sizes = [8, 8], strides = [1, 1]} : vector<8x32xf32> to vector<8x8xf32>
    %55 = vector.extract_strided_slice %13 {offsets = [0, 16], sizes = [8, 8], strides = [1, 1]} : vector<8x32xf32> to vector<8x8xf32>
    %cst_31 = arith.constant dense<0.000000e+00> : vector<8x8xf32>
    %56 = tpu.matmul %53, %54, %cst_31 {dimension_numbers = #tpu.dot_dimension_numbers<[1], [1], [0], [0], [0, 0, 1, 0], [], []>} : vector<8x8xf32>, vector<8x8xf32>, vector<8x8xf32> -> vector<8x8xf32>
    %cst_32 = arith.constant -1.76776698E+19 : f32
    %57 = vector.broadcast %cst_32 : f32 to vector<8x8xf32>
    %58 = arith.select %18, %57, %56 : vector<8x8xi1>, vector<8x8xf32>
    %cst_33 = arith.constant dense<0xFF800000> : vector<8xf32>
    %59 = vector.multi_reduction <maximumf>, %58, %cst_33 [1] : vector<8x8xf32> to vector<8xf32>
    %60 = vector.shape_cast %59 : vector<8xf32> to vector<8x1xf32>
    %61 = vector.broadcast %60 : vector<8x1xf32> to vector<8x8xf32>
    %62 = arith.subf %58, %61 : vector<8x8xf32>
    %63 = math.exp %62 : vector<8x8xf32>
    %cst_34 = arith.constant dense<0.000000e+00> : vector<8xf32>
    %64 = vector.multi_reduction <add>, %63, %cst_34 [1] : vector<8x8xf32> to vector<8xf32>
    %65 = vector.shape_cast %64 : vector<8xf32> to vector<8x1xf32>
    %66 = tpu.reciprocal %65 {approx = true} : vector<8x1xf32> -> vector<8x1xf32>
    %67 = vector.broadcast %66 : vector<8x1xf32> to vector<8x8xf32>
    %68 = arith.mulf %63, %67 : vector<8x8xf32>
    %cst_35 = arith.constant dense<0.000000e+00> : vector<8x8xf32>
    %69 = tpu.matmul %68, %55, %cst_35 {dimension_numbers = #tpu.dot_dimension_numbers<[1], [0], [0], [1], [0, 0, 1, 1], [], []>} : vector<8x8xf32>, vector<8x8xf32>, vector<8x8xf32> -> vector<8x8xf32>
    %70 = vector.extract_strided_slice %5 {offsets = [0, 24], sizes = [8, 8], strides = [1, 1]} : vector<8x32xf32> to vector<8x8xf32>
    %71 = vector.extract_strided_slice %9 {offsets = [0, 24], sizes = [8, 8], strides = [1, 1]} : vector<8x32xf32> to vector<8x8xf32>
    %72 = vector.extract_strided_slice %13 {offsets = [0, 24], sizes = [8, 8], strides = [1, 1]} : vector<8x32xf32> to vector<8x8xf32>
    %cst_36 = arith.constant dense<0.000000e+00> : vector<8x8xf32>
    %73 = tpu.matmul %70, %71, %cst_36 {dimension_numbers = #tpu.dot_dimension_numbers<[1], [1], [0], [0], [0, 0, 1, 0], [], []>} : vector<8x8xf32>, vector<8x8xf32>, vector<8x8xf32> -> vector<8x8xf32>
    %cst_37 = arith.constant -1.76776698E+19 : f32
    %74 = vector.broadcast %cst_37 : f32 to vector<8x8xf32>
    %75 = arith.select %18, %74, %73 : vector<8x8xi1>, vector<8x8xf32>
    %cst_38 = arith.constant dense<0xFF800000> : vector<8xf32>
    %76 = vector.multi_reduction <maximumf>, %75, %cst_38 [1] : vector<8x8xf32> to vector<8xf32>
    %77 = vector.shape_cast %76 : vector<8xf32> to vector<8x1xf32>
    %78 = vector.broadcast %77 : vector<8x1xf32> to vector<8x8xf32>
    %79 = arith.subf %75, %78 : vector<8x8xf32>
    %80 = math.exp %79 : vector<8x8xf32>
    %cst_39 = arith.constant dense<0.000000e+00> : vector<8xf32>
    %81 = vector.multi_reduction <add>, %80, %cst_39 [1] : vector<8x8xf32> to vector<8xf32>
    %82 = vector.shape_cast %81 : vector<8xf32> to vector<8x1xf32>
    %83 = tpu.reciprocal %82 {approx = true} : vector<8x1xf32> -> vector<8x1xf32>
    %84 = vector.broadcast %83 : vector<8x1xf32> to vector<8x8xf32>
    %85 = arith.mulf %80, %84 : vector<8x8xf32>
    %cst_40 = arith.constant dense<0.000000e+00> : vector<8x8xf32>
    %86 = tpu.matmul %85, %72, %cst_40 {dimension_numbers = #tpu.dot_dimension_numbers<[1], [0], [0], [1], [0, 0, 1, 1], [], []>} : vector<8x8xf32>, vector<8x8xf32>, vector<8x8xf32> -> vector<8x8xf32>
    %87 = tpu.concatenate %35, %52, %69, %86 in 1 : vector<8x8xf32>, vector<8x8xf32>, vector<8x8xf32>, vector<8x8xf32> -> vector<8x32xf32>
    %c0_41 = arith.constant 0 : index
    %c0_42 = arith.constant 0 : index
    %88 = vector.load %arg8[%c0_41, %c0_42] : memref<32x32xf32, #tpu.memory_space<vmem>>, vector<32x32xf32>
    %cst_43 = arith.constant dense<0.000000e+00> : vector<8x32xf32>
    %89 = tpu.matmul %87, %88, %cst_43 {dimension_numbers = #tpu.dot_dimension_numbers<[1], [0], [0], [1], [0, 0, 1, 1], [], []>} : vector<8x32xf32>, vector<32x32xf32>, vector<8x32xf32> -> vector<8x32xf32>
    %c0_44 = arith.constant 0 : index
    %c0_45 = arith.constant 0 : index
    %90 = vector.load %arg9[%c0_44, %c0_45] : memref<1x32xf32, #tpu.memory_space<vmem>>, vector<1x32xf32>
    %91 = vector.broadcast %90 : vector<1x32xf32> to vector<8x32xf32>
    %92 = arith.addf %89, %91 : vector<8x32xf32>
    %c0_46 = arith.constant 0 : index
    %c0_47 = arith.constant 0 : index
    %c0_48 = arith.constant 0 : index
    %93 = vector.load %arg10[%c0_46, %c0_47, %c0_48] : memref<1x8x32xf32, #tpu.memory_space<vmem>>, vector<1x8x32xf32>
    %94 = vector.shape_cast %93 : vector<1x8x32xf32> to vector<8x32xf32>
    %95 = vector.shape_cast %92 : vector<8x32xf32> to vector<1x8x32xf32>
    tpu.vector_store %arg10[%c0_46, %c0_47, %c0_48], %95 {strides = array<i32>} : memref<1x8x32xf32, #tpu.memory_space<vmem>>, vector<1x8x32xf32>,
    return
  }
  func.func @transform_0(%arg0: i32) -> (i32, i32, i32) {
    %c0_i32 = arith.constant 0 : i32
    %c0_i32_0 = arith.constant 0 : i32
    %c0_i32_1 = arith.constant 0 : i32
    return %arg0, %c0_i32, %c0_i32_0 : i32, i32, i32
  }
  func.func @transform_1(%arg0: i32) -> (i32, i32, i32) {
    %c0_i32 = arith.constant 0 : i32
    %c0_i32_0 = arith.constant 0 : i32
    %c0_i32_1 = arith.constant 0 : i32
    return %arg0, %c0_i32, %c0_i32_0 : i32, i32, i32
  }
  func.func @transform_2(%arg0: i32) -> (i32, i32, i32) {
    %c0_i32 = arith.constant 0 : i32
    %c0_i32_0 = arith.constant 0 : i32
    %c0_i32_1 = arith.constant 0 : i32
    return %arg0, %c0_i32, %c0_i32_0 : i32, i32, i32
  }
  func.func @transform_3(%arg0: i32) -> (i32, i32, i32, i32) {
    %c0_i32 = arith.constant 0 : i32
    %c0_i32_0 = arith.constant 0 : i32
    %c0_i32_1 = arith.constant 0 : i32
    %c0_i32_2 = arith.constant 0 : i32
    return %arg0, %c0_i32, %c0_i32_0, %c0_i32_1 : i32, i32, i32, i32
  }
  func.func @transform_4(%arg0: i32) -> (i32, i32) {
    %c0_i32 = arith.constant 0 : i32
    %c0_i32_0 = arith.constant 0 : i32
    %c0_i32_1 = arith.constant 0 : i32
    return %c0_i32, %c0_i32_0 : i32, i32
  }
  func.func @transform_5(%arg0: i32) -> (i32, i32) {
    %c0_i32 = arith.constant 0 : i32
    %c0_i32_0 = arith.constant 0 : i32
    %c0_i32_1 = arith.constant 0 : i32
    return %c0_i32, %c0_i32_0 : i32, i32
  }
  func.func @transform_6(%arg0: i32) -> (i32, i32) {
    %c0_i32 = arith.constant 0 : i32
    %c0_i32_0 = arith.constant 0 : i32
    %c0_i32_1 = arith.constant 0 : i32
    return %c0_i32, %c0_i32_0 : i32, i32
  }
  func.func @transform_7(%arg0: i32) -> (i32, i32) {
    %c0_i32 = arith.constant 0 : i32
    %c0_i32_0 = arith.constant 0 : i32
    %c0_i32_1 = arith.constant 0 : i32
    return %c0_i32, %c0_i32_0 : i32, i32
  }
  func.func @transform_8(%arg0: i32) -> (i32, i32) {
    %c0_i32 = arith.constant 0 : i32
    %c0_i32_0 = arith.constant 0 : i32
    %c0_i32_1 = arith.constant 0 : i32
    return %c0_i32, %c0_i32_0 : i32, i32
  }
  func.func @transform_9(%arg0: i32) -> (i32, i32, i32) {
    %c0_i32 = arith.constant 0 : i32
    %c0_i32_0 = arith.constant 0 : i32
    %c0_i32_1 = arith.constant 0 : i32
    return %arg0, %c0_i32, %c0_i32_0 : i32, i32, i32
  }
}

</mosaic_0001>

<bundles_post_ra>
// kernel: tpu_custom_call.1
= control target key start
LH: loop header
LB: loop body
LE: loop exit
PB: predicated region body
PF: predicated region fallthrough
CT: control target
= control target key end

     0   :  { %s2804_s0 = inlined_call_operand.hbm [shape: f32[2,8,32], index: 0, kind: input, shape index: {}]   ;;  %s2805_s1 = inlined_call_operand.hbm [shape: f32[2,8,32], index: 1, kind: input, shape index: {}]   ;;  %s2806_s2 = inlined_call_operand.hbm [shape: f32[2,8,32], index: 2, kind: input, shape index: {}]   ;;  %s2807_s3 = inlined_call_operand.vmem [shape: s8[2,1,8,8], index: 3, kind: input, shape index: {}]   ;;  %s2808_s4 = inlined_call_operand.hbm [shape: f32[32,32], index: 4, kind: input, shape index: {}]   ;;  %s2809_s5 = inlined_call_operand.hbm [shape: f32[32,32], index: 5, kind: input, shape index: {}]   ;;  %s2810_s6 = inlined_call_operand.hbm [shape: f32[32,32], index: 6, kind: input, shape index: {}]   ;;  %s2811_s7 = inlined_call_operand.hbm [shape: f32[32,32], index: 7, kind: input, shape index: {}]   ;;  %s2812_s8 = inlined_call_operand.vmem [shape: f32[1,32], index: 8, kind: input, shape index: {}]   ;;  %s2813_s9 = inlined_call_operand.hbm [shape: f32[2,8,32], index: 9, kind: output, shape index: {}]  }
   0x1   :  { %2839 = sst [smem:[#allocation26_spill]] %s2805_s1 }
   0x2   :  { %2840 = sst [smem:[#allocation27_spill]] %s2808_s4 }
   0x3   :  { %2841 = sst [smem:[#allocation28_spill]] %s2810_s6 }
   0x4   :  { %2842 = sst [smem:[#allocation29_spill]] %s2812_s8 }
   0x5   :  { %2843 = sst [smem:[#allocation30_spill]] %s2813_s9 }
   0x6   :  { %14 = vsyncpa [#allocation3], 0 }
   0x7   :  { %16 = vsyncpa [#allocation3 + $0x1], 0 }
   0x8   :  { %17 = vsyncpa [#allocation6], 0 }
   0x9   :  { %19 = vsyncpa [#allocation6 + $0x1], 0 }
   0xa   :  { %20 = vsyncpa [#allocation9], 0 }
   0xb   :  { %21 = vsyncpa [#allocation12], 0 }
   0xc   :  { %22 = vsyncpa [#allocation4], 0 }
   0xd   :  { %24 = vsyncpa [#allocation4 + $0x1], 0  ;;  %s2336_s30 = smov 0   ;;  %s2338_s10 = smov 0  }
   0xe   :  { %s2340_s11 = smov 0   ;;  %s2342_s12 = smov 0  }
   0xf LB: > { %2844 = sst [smem:[#allocation20_spill]] %s2253_s30  ;;  %s2267_s13 = smov [#allocation8]   ;;  %s2265_s12 = sphi %s2342_s12, %s2886_s12   ;;  %s2261_s11 = sphi %s2340_s11, %s2890_s11   ;;  %s2257_s10 = sphi %s2338_s10, %s2889_s10   ;;  %s2253_s30 = sphi %s2336_s30, %s2888_s30  }
  0x10   : > { %2845 = sst [smem:[#allocation21_spill]] %s2265_s12  ;;  %s282_s14 = sshll.u32 %s2267_s13, 4  ;;  %s2362_s14 = int_to_ptr.vmem [resolvable:$true] %s282_s14 }
  0x11   : > { %s2357_s15 = sadd.s32 4294967295, %s2265_s12   ;;  %p1674_p0 = scmp.ge.s32.totalorder %s2265_s12, 1 }
  0x12   : > { %p2825_p1 = scmp.eq.s32.totalorder %s2357_s15, 0  ;;  %p270_p2 = scmp.lt.s32.totalorder %s2265_s12, 3 }
  0x13   : > { %s2268_s17 = smov [#allocation11]   ;;  %s2848_s4 = sld [smem:[#allocation27_spill]] }
  0x14   : > { %p2364_p3 = pnand %p1674_p0, %p270_p2  ;;  %s308_s18 = sshll.u32 %s2268_s17, 4  ;;  %s2377_s18 = int_to_ptr.vmem [resolvable:$true] %s308_s18 }
  0x16   : > { %s2846_s16 = scalar_select %p2364_p3, 1, 0 }
  0x17   : > { %p1885_p5 = pneg %p2364_p3 }
  0x19   : > { %p2373_p6 = pnand %p1885_p5, %p2825_p1  ;;  %s1985_s22 = scalar_lea.hbm %s2848_s4, 512 }
  0x1a   : > { %p1986_p7 = scmp.ne.s32.totalorder %s2848_s4, %s1985_s22  ;;  %p1992_p11 = scmp.lt.u32.totalorder %s1985_s22, %s2848_s4 }
  0x1b   : > { %s2847_s19 = scalar_select %p2373_p6, 1, 0 }
  0x1c   : > { %p2387_p8 = pneg %p2373_p6 }
  0x1e   : > { %s2849_s25 = scalar_select %p2387_p8, 1, 0 }
  0x1f   : > { %p1988_p9 = pnand %p2387_p8, %p1986_p7 }
  0x21   : > { %p1989_p10 = pneg %p1988_p9 }
  0x23   : > { %p1994_p12 = pnand %p1992_p11, %p1989_p10 }
  0x25   : > { %1997 = shalt.err (!%p1994_p12)
}
  0x26   : > { %s1998_s28 = scalar_lea.vmem %s2362_s14, 512  ;;  %p2006_p5 = scmp.lt.s32.totalorder %s2362_s14, %s2362_s14 }
  0x27   : > { %p1999_p13 = scmp.ne.s32.totalorder %s2362_s14, %s1998_s28  ;;  %p2007_p4 = scmp.lt.s32.totalorder %s1998_s28, %s1998_s28 }
  0x29   : > { %p2001_p0 = pnand %p1999_p13, %p2387_p8  ;;  %p2008_p7 = por %p2007_p4, %p2006_p5 }
  0x2b   : > { %p2002_p2 = pneg %p2001_p0 }
  0x2d   : > { %p2009_p9 = pnand %p2008_p7, %p2002_p2 }
  0x2f   : > { %2012 = shalt.err (!%p2009_p9)
}
  0x30   : > { %s2815_s29 = smov 128   ;;  %s2817_s13 = smov 8  }
  0x31   : > { %1888 = dma.hbm_to_vmem [thread:$0]  (!%p2373_p6), %s2848_s4, 512, %s2362_s14, [#allocation9], %s2815_s29, %s2815_s29, %s2817_s13  }
  0x32   : > { %s2850_s6 = sld [smem:[#allocation28_spill]] }
  0x38   : > { %s2013_s23 = scalar_lea.hbm %s2850_s6, 512 }
  0x39   : > { %p2014_p4 = scmp.ne.s32.totalorder %s2850_s6, %s2013_s23  ;;  %p2020_p12 = scmp.lt.u32.totalorder %s2013_s23, %s2850_s6 }
  0x3b   : > { %p2016_p10 = pnand %p2014_p4, %p2387_p8 }
  0x3d   : > { %p2017_p11 = pneg %p2016_p10 }
  0x3f   : > { %p2022_p13 = pnand %p2020_p12, %p2017_p11 }
  0x41   : > { %2025 = shalt.err (!%p2022_p13)
}
  0x42   : > { %s2026_s14 = scalar_lea.vmem %s2377_s18, 512  ;;  %p2034_p7 = scmp.lt.s32.totalorder %s2377_s18, %s2377_s18 }
  0x43   : > { %p2027_p0 = scmp.ne.s32.totalorder %s2377_s18, %s2026_s14  ;;  %p2035_p9 = scmp.lt.s32.totalorder %s2026_s14, %s2026_s14 }
  0x45   : > { %p2029_p2 = pnand %p2027_p0, %p2387_p8  ;;  %p2036_p4 = por %p2035_p9, %p2034_p7 }
  0x47   : > { %p2030_p5 = pneg %p2029_p2 }
  0x49   : > { %p2037_p10 = pnand %p2036_p4, %p2030_p5 }
  0x4b   : > { %2040 = shalt.err (!%p2037_p10)
}
  0x4c   : > { %1894 = dma.hbm_to_vmem [thread:$0]  (!%p2373_p6), %s2850_s6, 512, %s2377_s18, [#allocation12], %s2815_s29, %s2815_s29, %s2817_s13  }
  0x4d   : > { %s1673_s21 = sadd.s32 4294967294, %s2265_s12   ;;  %s2439_s22 = sadd.s32 1, %s2265_s12  }
  0x4e   : > { %2851 = sst [smem:[#allocation22_spill]] %s2439_s22  ;;  %s34_s23 = ssub.s32 %s2265_s12, %s2439_s22 }
  0x4f   : > { %s37_s24 = sadd.s32 1, %s2261_s11  ;;  %p35_p11 = scmp.eq.s32.totalorder %s34_s23, 0 }
  0x50   : > { %p44_p12 = scmp.ne.s32.totalorder %s2261_s11, %s2257_s10  ;;  %p45_p13 = scmp.eq.s32.totalorder %s2265_s12, 0 }
  0x51   : > { %p50_p0 = scmp.ne.s32.totalorder %s2257_s10, %s2253_s30  ;;  %p257_p7 = scmp.eq.s32.totalorder %s2357_s15, 1 }
  0x52   : > { %s2450_s26 = scalar_select %p35_p11, %s2261_s11, %s37_s24  }
  0x53   : > { %p46_p2 = por %p45_p13, %p44_p12  ;;  %p2454_p5 = por %p2825_p1, %p50_p0 }
  0x54   : > { %2852 = sst [smem:[#allocation23_spill]] %s2450_s26  ;;  %p263_p9 = scmp.eq.s32.totalorder %s1673_s21, 1 }
  0x55   : > { %s2853_s27 = scalar_select %p2454_p5, 1, 0 }
  0x56   : > { %p1916_p4 = scmp.lt.s32.totalorder %s2265_s12, 2  ;;  %s2819_s18 = sand.u32 1, %s2261_s11  }
  0x57   : > { %p2461_p10 = por %p257_p7, %p44_p12  ;;  %p2465_p3 = por %p263_p9, %p50_p0 }
  0x58   : > { %s2471_s17 = sshll.u32 %s2819_s18, 3  ;;  %s2474_s20 = sshll.u32 %s2265_s12, 7 }
  0x59   : > { %s2854_s28 = scalar_select %p2461_p10, 1, 0 }
  0x5a   : > { %s2856_s14 = scalar_select %p2465_p3, 1, 0 }
  0x5b   : > { %2855 = sst [smem:[#allocation24_spill]] %s2854_s28  ;;  %p2476_p11 = pnand %p1916_p4, %p46_p2 }
  0x5c   : > { %2857 = sst [smem:[#allocation25_spill]] %s2856_s14  ;;  %s356_s21 = sand.u32 1, %s2265_s12  }
  0x5d   : > { %s2858_s23 = scalar_select %p2476_p11, 1, 0 }
  0x5e   : > { %s2859_s1 = sld [smem:[#allocation26_spill]]  ;;  %s360_s18 = scalar_lea.vmem [#allocation5], %s2471_s17 }
  0x5f   : > { %s367_s4 = sshll.u32 %s360_s18, 4  ;;  %s2271_s6 = smov [#allocation10]   ;;  %s2488_s4 = int_to_ptr.vmem [resolvable:$true] %s367_s4 }
  0x60   : > { %s2490_s26 = sshll.u32 %s2271_s6, 4  ;;  %s2492_s22 = scalar_lea.sflag [#allocation6], %s356_s21  ;;  %s296_s26 = int_to_ptr.vmem [resolvable:$true] %s2490_s26 }
  0x61   : > { %p2498_p13 = pneg %p2476_p11 }
  0x63   : > { %s2860_s29 = scalar_select %p2498_p13, 1, 0 }
  0x64   : > { %s2485_s13 = scalar_lea.hbm %s2859_s1, %s2474_s20  ;;  %s2046_s12 = scalar_lea.hbm %s2859_s1, 256 }
  0x65   : > { %s2041_s14 = scalar_lea.hbm %s2485_s13, 128  ;;  %p2047_p7 = scmp.lt.u32.totalorder %s2485_s13, %s2859_s1 }
  0x66   : > { %p2042_p12 = scmp.ne.s32.totalorder %s2485_s13, %s2041_s14  ;;  %p2048_p9 = scmp.lt.u32.totalorder %s2046_s12, %s2041_s14 }
  0x67   : > { %p2050_p1 = scmp.lt.u32.totalorder %s2041_s14, %s2485_s13 }
  0x68   : > { %p2044_p0 = pnand %p2498_p13, %p2042_p12  ;;  %p2049_p4 = por %p2048_p9, %p2047_p7 }
  0x6a   : > { %p2045_p2 = pneg %p2044_p0  ;;  %p2051_p3 = por %p2050_p1, %p2049_p4 }
  0x6c   : > { %p2052_p10 = pnand %p2051_p3, %p2045_p2 }
  0x6e   : > { %2055 = shalt.err (!%p2052_p10)
}
  0x6f   : > { %s2056_s21 = scalar_lea.vmem %s2488_s4, 128  ;;  %s2272_s24 = smov [#allocation5]  }
  0x70   : > { %p2057_p12 = scmp.ne.s32.totalorder %s2488_s4, %s2056_s21  ;;  %s2061_s18 = sshll.u32 %s2272_s24, 4  ;;  %s2062_s18 = int_to_ptr.vmem [resolvable:$false] %s2061_s18 }
  0x71   : > { %s2063_s30 = scalar_lea.vmem %s2062_s18, 256  ;;  %p2064_p6 = scmp.lt.s32.totalorder %s2488_s4, %s2062_s18 }
  0x72   : > { %p2059_p0 = pnand %p2057_p12, %p2498_p13  ;;  %p2065_p8 = scmp.lt.s32.totalorder %s2063_s30, %s2056_s21 }
  0x74   : > { %p2060_p5 = pneg %p2059_p0  ;;  %p2066_p7 = por %p2065_p8, %p2064_p6 }
  0x76   : > { %p2067_p9 = pnand %p2066_p7, %p2060_p5 }
  0x78   : > { %2070 = shalt.err (!%p2067_p9)
}
  0x79   : > { %1904 = dma.hbm_to_vmem [thread:$0]  (!%p2476_p11), %s2485_s13, 128, %s2488_s4, %s2492_s22  }
  0x7a   : > { %s2071_s6 = scalar_lea.hbm %s2809_s5, 512  ;;  %p2861_p3 = scmp.ne.s32.totalorder %s2849_s25, 0 }
  0x7b   : > { %p2072_p1 = scmp.ne.s32.totalorder %s2809_s5, %s2071_s6  ;;  %p2078_p5 = scmp.lt.u32.totalorder %s2071_s6, %s2809_s5 }
  0x7d   : > { %p2074_p6 = pnand %p2072_p1, %p2861_p3 }
  0x7f   : > { %p2075_p8 = pneg %p2074_p6 }
  0x81   : > { %p2080_p10 = pnand %p2078_p5, %p2075_p8 }
  0x83   : > { %2083 = shalt.err (!%p2080_p10)
}
  0x84   : > { %s2084_s30 = scalar_lea.vmem %s296_s26, 512  ;;  %p2092_p0 = scmp.lt.s32.totalorder %s296_s26, %s296_s26 }
  0x85   : > { %p2085_p2 = scmp.ne.s32.totalorder %s296_s26, %s2084_s30  ;;  %p2093_p7 = scmp.lt.s32.totalorder %s2084_s30, %s2084_s30 }
  0x87   : > { %p2087_p4 = pnand %p2085_p2, %p2861_p3  ;;  %p2094_p9 = por %p2093_p7, %p2092_p0 }
  0x89   : > { %p2088_p12 = pneg %p2087_p4 }
  0x8b   : > { %p2095_p11 = pnand %p2094_p9, %p2088_p12 }
  0x8d   : > { %2098 = shalt.err (!%p2095_p11)
}
  0x8e   : > { %p2862_p1 = scmp.ne.s32.totalorder %s2847_s19, 0  ;;  %s2863_s1 = smov 8  }
  0x8f   : > { %s2864_s4 = smov 128   ;;  %s2273_s14 = smov [#allocation13]  }
  0x90   : > { %1891 = dma.hbm_to_vmem [thread:$0]  (!%p2862_p1), %s2809_s5, 512, %s296_s26, [#allocation9], %s2864_s4, %s2864_s4, %s2863_s1  }
  0x91   : > { %s321_s6 = sshll.u32 %s2273_s14, 4  ;;  %s2099_s18 = scalar_lea.hbm %s2811_s7, 512  ;;  %s322_s6 = int_to_ptr.vmem [resolvable:$true] %s321_s6 }
  0x92   : > { %p2100_p11 = scmp.ne.s32.totalorder %s2811_s7, %s2099_s18  ;;  %p2106_p5 = scmp.lt.u32.totalorder %s2099_s18, %s2811_s7 }
  0x94   : > { %p2102_p6 = pnand %p2100_p11, %p2861_p3 }
  0x96   : > { %p2103_p8 = pneg %p2102_p6 }
  0x98   : > { %p2108_p10 = pnand %p2106_p5, %p2103_p8 }
  0x9a   : > { %2111 = shalt.err (!%p2108_p10)
}
  0x9b   : > { %s2112_s26 = scalar_lea.vmem %s322_s6, 512  ;;  %p2120_p0 = scmp.lt.s32.totalorder %s322_s6, %s322_s6 }
  0x9c   : > { %p2113_p2 = scmp.ne.s32.totalorder %s322_s6, %s2112_s26  ;;  %p2121_p7 = scmp.lt.s32.totalorder %s2112_s26, %s2112_s26 }
  0x9e   : > { %p2115_p4 = pnand %p2113_p2, %p2861_p3  ;;  %p2122_p9 = por %p2121_p7, %p2120_p0 }
  0xa0   : > { %p2116_p12 = pneg %p2115_p4 }
  0xa2   : > { %p2123_p13 = pnand %p2122_p9, %p2116_p12 }
  0xa4   : > { %2126 = shalt.err (!%p2123_p13)
}
  0xa5   : > { %1897 = dma.hbm_to_vmem [thread:$0]  (!%p2862_p1), %s2811_s7, 512, %s322_s6, [#allocation12], %s2864_s4, %s2864_s4, %s2863_s1  }
  0xa6   : > { %s2569_s13 = scalar_lea.hbm %s2804_s0, %s2474_s20  ;;  %s342_s19 = scalar_lea.vmem [#allocation2], %s2471_s17 }
  0xa7   : > { %s349_s12 = sshll.u32 %s342_s19, 4  ;;  %s2865_s14 = sand.u32 1, %s2261_s11   ;;  %s350_s12 = int_to_ptr.vmem [resolvable:$true] %s349_s12 }
  0xa8   : > { %s339_s24 = scalar_lea.sflag [#allocation3], %s2865_s14  ;;  %s2127_s21 = scalar_lea.hbm %s2569_s13, 128 }
  0xa9   : > { %p2128_p13 = scmp.ne.s32.totalorder %s2569_s13, %s2127_s21  ;;  %p2866_p3 = scmp.ne.s32.totalorder %s2860_s29, 0 }
  0xaa   : > { %s2132_s6 = scalar_lea.hbm %s2804_s0, 256  ;;  %p2133_p1 = scmp.lt.u32.totalorder %s2569_s13, %s2804_s0 }
  0xab   : > { %p2130_p11 = pnand %p2128_p13, %p2866_p3  ;;  %p2134_p8 = scmp.lt.u32.totalorder %s2132_s6, %s2127_s21 }
  0xac   : > { %p2136_p10 = scmp.lt.u32.totalorder %s2127_s21, %s2569_s13 }
  0xad   : > { %p2131_p6 = pneg %p2130_p11  ;;  %p2135_p5 = por %p2134_p8, %p2133_p1 }
  0xaf   : > { %p2137_p2 = por %p2136_p10, %p2135_p5 }
  0xb1   : > { %p2138_p4 = pnand %p2137_p2, %p2131_p6 }
  0xb3   : > { %2141 = shalt.err (!%p2138_p4)
}
  0xb4   : > { %s2142_s26 = scalar_lea.vmem %s350_s12, 128  ;;  %s2274_s8 = smov [#allocation2]  }
  0xb5   : > { %p2143_p12 = scmp.ne.s32.totalorder %s350_s12, %s2142_s26  ;;  %s2147_s9 = sshll.u32 %s2274_s8, 4  ;;  %s2148_s9 = int_to_ptr.vmem [resolvable:$false] %s2147_s9 }
  0xb6   : > { %s2149_s25 = scalar_lea.vmem %s2148_s9, 256  ;;  %p2150_p9 = scmp.lt.s32.totalorder %s350_s12, %s2148_s9 }
  0xb7   : > { %p2145_p0 = pnand %p2143_p12, %p2866_p3  ;;  %p2151_p13 = scmp.lt.s32.totalorder %s2149_s25, %s2142_s26 }
  0xb9   : > { %p2146_p7 = pneg %p2145_p0  ;;  %p2152_p11 = por %p2151_p13, %p2150_p9 }
  0xbb   : > { %p2153_p1 = pnand %p2152_p11, %p2146_p7 }
  0xbd   : > { %2156 = shalt.err (!%p2153_p1)
}
  0xbe   : > { %p2867_p8 = scmp.ne.s32.totalorder %s2858_s23, 0  ;;  %s2595_s14 = scalar_lea.hbm %s2806_s2, %s2474_s20 }
  0xbf   : > { %s378_s21 = scalar_lea.vmem [#allocation7], %s2471_s17  ;;  %s2157_s4 = scalar_lea.hbm %s2595_s14, 128 }
  0xc0   : > { %1901 = dma.hbm_to_vmem [thread:$0]  (!%p2867_p8), %s2569_s13, 128, %s350_s12, %s339_s24  }
  0xc1   : > { %s385_s1 = sshll.u32 %s378_s21, 4  ;;  %p2158_p6 = scmp.ne.s32.totalorder %s2595_s14, %s2157_s4  ;;  %s386_s1 = int_to_ptr.vmem [resolvable:$true] %s385_s1 }
  0xc2   : > { %s2162_s13 = scalar_lea.hbm %s2806_s2, 256  ;;  %p2163_p2 = scmp.lt.u32.totalorder %s2595_s14, %s2806_s2 }
  0xc3   : > { %p2160_p5 = pnand %p2158_p6, %p2866_p3  ;;  %p2164_p4 = scmp.lt.u32.totalorder %s2162_s13, %s2157_s4 }
  0xc4   : > { %p2166_p0 = scmp.lt.u32.totalorder %s2157_s4, %s2595_s14 }
  0xc5   : > { %p2161_p10 = pneg %p2160_p5  ;;  %p2165_p12 = por %p2164_p4, %p2163_p2 }
  0xc7   : > { %p2167_p7 = por %p2166_p0, %p2165_p12 }
  0xc9   : > { %p2168_p9 = pnand %p2167_p7, %p2161_p10 }
  0xcb   : > { %2171 = shalt.err (!%p2168_p9)
}
  0xcc   : > { %s2172_s17 = scalar_lea.vmem %s386_s1, 128  ;;  %s2275_s20 = smov [#allocation7]  }
  0xcd   : > { %p2173_p13 = scmp.ne.s32.totalorder %s386_s1, %s2172_s17  ;;  %s2177_s30 = sshll.u32 %s2275_s20, 4  ;;  %s2178_s30 = int_to_ptr.vmem [resolvable:$false] %s2177_s30 }
  0xce   : > { %s2179_s26 = scalar_lea.vmem %s2178_s30, 256  ;;  %p2180_p6 = scmp.lt.s32.totalorder %s386_s1, %s2178_s30 }
  0xcf   : > { %p2175_p11 = pnand %p2173_p13, %p2866_p3  ;;  %p2181_p5 = scmp.lt.s32.totalorder %s2179_s26, %s2172_s17 }
  0xd1   : > { %p2176_p1 = pneg %p2175_p11  ;;  %p2182_p8 = por %p2181_p5, %p2180_p6 }
  0xd3   : > { %p2183_p2 = pnand %p2182_p8, %p2176_p1 }
  0xd5   : > { %2186 = shalt.err (!%p2183_p2)
}
  0xd6   : > { %p2868_p4 = scmp.ne.s32.totalorder %s2858_s23, 0  ;;  %p2869_p10 = scmp.ne.s32.totalorder %s2846_s16, 0 }
  0xd7   : > { %s2619_s29 = sand.u32 (!%p2869_p10), 1, %s2257_s10   ;;  %p2870_p3 = scmp.ne.s32.totalorder (!%p2869_p10), %s2853_s27, 0 }
  0xd8   : > { %1907 = dma.hbm_to_vmem [thread:$0]  (!%p2868_p4), %s2595_s14, 128, %s386_s1, %s2492_s22  }
  0xd9   : > { %401 = sbr.rel (%p2869_p10) target bundleno = 2138 (0x85a), region = 56  ;;  %s2622_s8 = sshll.u32 (!%p2869_p10), %s2619_s29, 3 }
  0xda   : > { %s404_s9 = scalar_lea.sflag (!%p2869_p10), [#allocation3], %s2619_s29  ;;  %s407_s25 = scalar_lea.vmem (!%p2869_p10), [#allocation2], %s2622_s8 }
  0xe0   : > { %2232 = dma.done.wait (%p2870_p3), %s404_s9, 128  }
  0xe1   : > { %2234 = vsyncadd (%p2870_p3), %s404_s9, 4294967168  ;;  %s412_s16 = sand.u32 1, %s2357_s15   ;;  %s416_s23 = scalar_lea.vmem [#allocation5], %s2622_s8 }
  0xe2   : > { %s413_s22 = scalar_lea.sflag [#allocation6], %s412_s16 }
  0xe3   : > { %2236 = dma.done.wait (%p2870_p3), %s413_s22, 256  }
  0xe4   : > { %2238 = vsyncadd (%p2870_p3), %s413_s22, 4294967040  ;;  %s425_s28 = scalar_lea.vmem [#allocation7], %s2622_s8  ;;  %p2871_p8 = scmp.eq.s32.totalorder %s2357_s15, 0 }
  0xe6   : > { %2240 = dma.done.wait (%p2871_p8), [#allocation9], 1024   ;;  %p2872_p12 = pmov %p2871_p8 }
  0xe7   : > { %p2873_p0 = pmov %p2871_p8 }
  0xe8   : > { %2242 = vsyncadd (%p2872_p12), [#allocation9], 4294966272 }
  0xe9   : > { %2244 = dma.done.wait (%p2873_p0), [#allocation12], 1024   ;;  %p2874_p7 = pmov %p2873_p0 }
  0xea   : > { %v2276_v0 = vmov 0.0|0.0   ;;  %vm2277_vm0 = vmmov 0   ;;  %v2278_v1 = vmov 0.0   ;;  %v575_v2 = vld [vmem:[#allocation10] sm:$0xff]  ;;  %v576_v3 = vld [vmem:[#allocation10 + $0x8] sm:$0xff]  ;;  %v577_v7 = vld [vmem:[#allocation10 + $0x10] sm:$0xff] }
  0xeb   : > { %2246 = vsyncadd (%p2874_p7), [#allocation12], 4294966272  ;;  %1843 = vmatprep.subr.bf16.mxu1 %v2276_v0  ;;  %1837 = vmatprep.subr.bf16.mxu0 %v2276_v0  ;;  %v495_v4 = vld [vmem:[#allocation11] sm:$0xff]  ;;  %v1844_v5 = vpack.c.bf16 %v576_v3, %v575_v2  ;;  %v496_v6 = vld [vmem:[#allocation11 + $0x8] sm:$0xff]  ;;  %vm499_vm1 = vcmask 261120   ;;  %vm733_vm2 = vcmask 64512  }
  0xec   : > { %1772 = vmatprep.mubr.msk.f32.mxu1 %vm2277_vm0, %v2278_v1  ;;  %1761 = vmatprep.mubr.msk.f32.mxu0 %vm2277_vm0, %v2278_v1  ;;  %v578_v8 = vld [vmem:[#allocation10 + $0x18] sm:$0xff]  ;;  %v1838_v9 = vpack.c.bf16 %v496_v6, %v495_v4  ;;  %v497_v10 = vld [vmem:[#allocation11 + $0x10] sm:$0xff]  ;;  %v574_v14 = vld [vmem:[%s416_s23] sm:$0xff]  ;;  %s2279_s27 = smov 120   ;;  %s2280_s19 = smov 112   ;;  %vm1407_vm4 = vcmask 130048  }
  0xed   : > { %v498_v11 = vld [vmem:[#allocation11 + $0x18] sm:$0xff]  ;;  %1845 = vmatpush3.bf16.msra.mxu1 %v1844_v5  ;;  %v1847_v12 = vpack.c.bf16 %v578_v8, %v577_v7  ;;  %s2281_s14 = smov 104   ;;  %v653_v21 = vld [vmem:[#allocation8] sm:$0xff]  ;;  %v654_v22 = vld [vmem:[#allocation8 + $0x8] sm:$0xff]  ;;  %p490_p9 = scmp.lt.s32.totalorder %s2357_s15, 1  ;;  %vm1409_vm5 = vcmask 195584  }
  0xee   : > { %1839 = vmatpush3.bf16.msra.mxu0 %v1838_v9  ;;  %1846 = vmatprep.subr.bf16.mxu1 %v2276_v0  ;;  %v1841_v13 = vpack.c.bf16 %v498_v11, %v497_v10  ;;  %v494_v15 = vld [vmem:[%s425_s28] sm:$0xff]  ;;  %v1850_v24 = vpack.c.bf16 %v654_v22, %v653_v21  ;;  %v1411_v30 = vld [vmem:[#allocation13] sm:$0xff]  ;;  %s2282_s13 = smov 8   ;;  %s2283_s12 = smov 16  }
  0xef   : > { %1840 = vmatprep.subr.bf16.mxu0 %v2276_v0  ;;  %v655_v23 = vld [vmem:[#allocation8 + $0x10] sm:$0xff]  ;;  %v656_v25 = vld [vmem:[#allocation8 + $0x18] sm:$0xff]  ;;  %s491_s21 = scalar_select %p490_p9, %s2357_s15, 1 }
  0xf0   : > { %v1853_v26 = vpack.c.bf16 %v656_v25, %v655_v23  ;;  %v652_v27 = vld [vmem:[%s407_s25] sm:$0xff]  ;;  %s2284_s24 = smov 24   ;;  %s2877_s17 = sld [smem:[#allocation24_spill]] }
  0xf1   : > { %1848 = vmatpush3.bf16.msra.mxu1 %v1847_v12  ;;  %s1695_s1 = sshll.u32 %s491_s21, 1  ;;  %s2878_s26 = sld [smem:[#allocation29_spill]] }
  0xf2   : > { %1842 = vmatpush3.bf16.msra.mxu0 %v1841_v13  ;;  %1786 = vmatprep.subr.mxu1 %v2278_v1  ;;  %s493_s18 = scalar_lea.vmem %s2807_s3, %s1695_s1  ;;  %s1714_s9 = sshll.u32 %s2357_s15, 7 }
  0xf3   : > { %1849 = vmatprep.subr.bf16.mxu0 %v2276_v0  ;;  %v730_v28 = vld [vmem:[%s493_s18] sm:$0x3]  ;;  %s489_s25 = scalar_lea.vmem [#allocation14], %s2622_s8  ;;  %s2879_s28 = sld [smem:[#allocation30_spill]] }
  0xf4   : > { %1773 = vmatmul.mubr.msk.f32.vlgmr.msra.gmra.mrb[0].mxu1 %vm499_vm1, %v574_v14  ;;  %v731_v29 = vunpack.c.0.s8 %v730_v28  ;;  %s1510_s16 = sshll.u32 %s489_s25, 4  ;;  %s2285_s15 = smov [#allocation14]   ;;  %s2761_s16 = int_to_ptr.vmem [resolvable:$true] %s1510_s16 }
  0xf5   : > { %1762 = vmatmul.mubr.msk.f32.vlgmr.msra.gmra.mrb[0].mxu0 %vm499_vm1, %v494_v15  ;;  %1788 = vmatprep.mubr.msk.f32.mxu1 %vm2277_vm0, %v2278_v1  ;;  %s2191_s8 = sshll.u32 %s2285_s15, 4  ;;  %s2192_s8 = int_to_ptr.vmem [resolvable:$false] %s2191_s8 }
  0xf6   : > { %1783 = vmatprep.mubr.msk.f32.mxu0 %vm2277_vm0, %v2278_v1  ;;  %1851 = vmatpush3.bf16.msra.mxu0 %v1850_v24  ;;  %vm2687_vm3 = vcmp.eq.s32.totalorder %v731_v29, 0  ;;  %p2880_p11 = scmp.ne.s32.totalorder %s2877_s17, 0  ;;  %s2193_s21 = scalar_lea.vmem %s2192_s8, 256 }
  0xf7   : > { %1852 = vmatprep.subr.bf16.mxu0 %v2276_v0  ;;  %p2194_p5 = scmp.lt.s32.totalorder %s2761_s16, %s2192_s8 }
  0xfa   : > { %1854 = vmatpush3.bf16.msra.mxu0 %v1853_v26 }
  0xfb   : > { %1806 = vmatprep.subr.mxu0 %v2278_v1 }
  0xfd   : > { %1784 = vmatmul.mubr.msk.f32.vlgmr.msra.gmra.mrb[2].mxu0 %vm499_vm1, %v652_v27 }
  0xfe   : > { %1808 = vmatprep.mubr.msk.f32.mxu0 %vm2277_vm0, %v2278_v1 }
 0x1c7   : > { %v648_v16 = vpop.f32.mrb[0].mxu1 }
 0x1c8   : > { %897 = vrot.lane.b32.xlu1 %v648_v16, %s2279_s27  ;;  %v569_v17 = vpop.f32.mrb[0].mxu0  ;;  %v1774_v18 = vpop.f32.mrb[1].mxu1  ;;  %1787 = vmatpush3.xpose.msk.msra.mxu1 %vm733_vm2, %v648_v16 }
 0x1c9   : > { %v573_v19 = vmul.f32 0.17677669, %v569_v17  ;;  %v1763_v20 = vpop.f32.mrb[1].mxu0  ;;  %1791 = vmatprep.subr.mxu1 %v2278_v1 }
 0x1cb   : > { %1789 = vmatmul.mubr.msk.f32.vlgmr.msra.gmra.mrb[2].mxu1 %vm733_vm2, %v573_v19 }
 0x1cc   : > { %895 = vrot.lane.b32.xlu1 %v573_v19, %s2279_s27  ;;  %1793 = vmatprep.mubr.msk.f32.mxu1 %vm2277_vm0, %v2278_v1 }
 0x1d0   : > { %1062 = vrot.lane.b32.xlu1 %v573_v19, %s2280_s19  ;;  %v2695_v40 = vpop.f32.mrb[2].mxu0 }
 0x1d1   : > { %v1785_v41 = vpop.f32.mrb[3].mxu0  ;;  %1792 = vmatpush3.msra.mxu1 %v2695_v40 }
 0x1d2   : > { %1796 = vmatprep.subr.mxu1 %v2278_v1 }
 0x1d4   : > { %1230 = vrot.lane.b32.xlu1 %v648_v16, %s2281_s14 }
 0x1d8   : > { %1228 = vrot.lane.b32.xlu1 %v573_v19, %s2281_s14 }
 0x23a   : > { %v898_v42 = vpop.permute.xlu1 %897 }
 0x23e   : > { %v896_v43 = vpop.permute.xlu1 %895 }
 0x242   : > { %v1063_v44 = vpop.permute.xlu1 %1062 }
 0x246   : > { %v1231_v47 = vpop.permute.xlu1 %1230 }
 0x24a   : > { %v1229_v49 = vpop.permute.xlu1 %1228 }
 0x29e   : > { %v806_v31 = vpop.f32.mrb[2].mxu1 }
 0x29f   : > { %v810_v32 = vsel %vm2687_vm3, -1.767767e+19, %v806_v31  ;;  %v1790_v33 = vpop.f32.mrb[3].mxu1  ;;  %v1412_v31 = vld [vmem:[#allocation13 + $0x8] sm:$0xff] }
 0x2a0   : > { %v811_v34 = vsel %vm733_vm2, %v810_v32, -inf  ;;  %v1413_v33 = vld [vmem:[#allocation13 + $0x10] sm:$0xff] }
 0x2a1   : > { %812 = vmax.xlane.f32.xlu0 %v811_v34  ;;  %v1414_v34 = vld [vmem:[#allocation13 + $0x18] sm:$0xff] }
 0x32e   : > { %v813_v35 = vpop.xlane.xlu0 %812 }
 0x32f   : > { %v814_v36 = vsub.f32 %v810_v32, %v813_v35  ;;  %v1856_v32 = vpack.c.bf16 %v1412_v31, %v1411_v30  ;;  %v1859_v35 = vpack.c.bf16 %v1414_v34, %v1413_v33 }
 0x331   : > { %v815_v37 = vmul.f32 1.442695, %v814_v36 }
 0x333   : > { %1969 = vpow2.f32 %v815_v37 }
 0x33d   : > { %v1970_v38 = vpop.eup %1969 }
 0x33e   : > { %v817_v39 = vsel %vm733_vm2, %v1970_v38, 0.0 }
 0x33f   : > { %818 = vadd.xlane.f32.xlu0 %v817_v39 }
 0x355   : > { %1064 = vrot.lane.b32.xlu0 %v648_v16, %s2280_s19 }
 0x3cc   : > { %v819_v45 = vpop.xlane.xlu0 %818 }
 0x3cd   : > { %1971 = vrcp.f32 %v819_v45 }
 0x3d0   : > { %v1065_v46 = vpop.permute.xlu0 %1064 }
 0x3d1   : > { %1807 = vmatpush3.xpose.msk.msra.mxu0 %vm733_vm2, %v1065_v46  ;;  %v1711_v46 = vld [vmem:[%s2878_s26] ss:$0 sm:$0xff] }
 0x3d2   : > { %1816 = vmatprep.subr.mxu0 %v2278_v1 }
 0x3d4   : > { %1809 = vmatmul.mubr.msk.f32.vlgmr.msra.gmra.mrb[4].mxu0 %vm733_vm2, %v1063_v44 }
 0x3d5   : > { %1817 = vmatpush3.xpose.msk.msra.mxu0 %vm733_vm2, %v1231_v47  ;;  %1818 = vmatprep.mubr.msk.f32.mxu0 %vm2277_vm0, %v2278_v1 }
 0x3d6   : > { %1855 = vmatprep.subr.bf16.mxu0 %v2276_v0 }
 0x3d7   : > { %v1972_v48 = vpop.eup %1971 }
 0x3d8   : > { %v821_v50 = vmul.f32 %v1972_v48, %v1970_v38  ;;  %1819 = vmatmul.mubr.msk.f32.vlgmr.msra.gmra.mrb[6].mxu0 %vm733_vm2, %v1229_v49 }
 0x3d9   : > { %1834 = vmatprep.mubr.msk.f32.mxu0 %vm2277_vm0, %v2278_v1  ;;  %1857 = vmatpush3.bf16.msra.mxu0 %v1856_v32 }
 0x3da   : > { %1794 = vmatmul.mubr.msk.f32.vlgmr.msra.gmra.mrb[4].mxu1 %vm733_vm2, %v821_v50  ;;  %1858 = vmatprep.subr.bf16.mxu0 %v2276_v0 }
 0x3db   : > { %1797 = vmatpush3.xpose.msk.msra.mxu1 %vm733_vm2, %v898_v42  ;;  %1798 = vmatprep.mubr.msk.f32.mxu1 %vm2277_vm0, %v2278_v1 }
 0x3dc   : > { %1801 = vmatprep.subr.mxu1 %v2278_v1 }
 0x3dd   : > { %1860 = vmatpush3.bf16.msra.mxu0 %v1859_v35 }
 0x3de   : > { %1799 = vmatmul.mubr.msk.f32.vlgmr.msra.gmra.mrb[6].mxu1 %vm733_vm2, %v896_v43 }
 0x3df   : > { %1803 = vmatprep.mubr.msk.f32.mxu1 %vm2277_vm0, %v2278_v1 }
 0x4a7   : > { %v1136_v51 = vpop.f32.mrb[4].mxu0 }
 0x4a8   : > { %v1140_v52 = vsel %vm2687_vm3, -1.767767e+19, %v1136_v51  ;;  %v1810_v53 = vpop.f32.mrb[5].mxu0 }
 0x4a9   : > { %v1141_v54 = vsel %vm733_vm2, %v1140_v52, -inf }
 0x4aa   : > { %1142 = vmax.xlane.f32.xlu0 %v1141_v54 }
 0x4ab   : > { %v1302_v55 = vpop.f32.mrb[6].mxu0 }
 0x4ac   : > { %v1820_v56 = vpop.f32.mrb[7].mxu0  ;;  %v1306_v63 = vsel %vm2687_vm3, -1.767767e+19, %v1302_v55 }
 0x4ad   : > { %v2721_v57 = vpop.f32.mrb[4].mxu1  ;;  %v1307_v2 = vsel %vm733_vm2, %v1306_v63, -inf }
 0x4ae   : > { %v1795_v58 = vpop.f32.mrb[5].mxu1 }
 0x4b1   : > { %v969_v59 = vpop.f32.mrb[6].mxu1 }
 0x4b2   : > { %v973_v60 = vsel %vm2687_vm3, -1.767767e+19, %v969_v59  ;;  %v1800_v61 = vpop.f32.mrb[7].mxu1 }
 0x4b3   : > { %v974_v62 = vsel %vm733_vm2, %v973_v60, -inf }
 0x4b4   : > { %975 = vmax.xlane.f32.xlu1 %v974_v62 }
 0x4b8   : > { %1308 = vmax.xlane.f32.xlu1 %v1307_v2 }
 0x537   : > { %v1143_v3 = vpop.xlane.xlu0 %1142 }
 0x538   : > { %v1144_v4 = vsub.f32 %v1140_v52, %v1143_v3 }
 0x53a   : > { %v1145_v5 = vmul.f32 1.442695, %v1144_v4 }
 0x53c   : > { %1973 = vpow2.f32 %v1145_v5 }
 0x541   : > { %v976_v6 = vpop.xlane.xlu1 %975 }
 0x542   : > { %v977_v14 = vsub.f32 %v973_v60, %v976_v6 }
 0x544   : > { %v978_v15 = vmul.f32 1.442695, %v977_v14 }
 0x545   : > { %v1309_v7 = vpop.xlane.xlu1 %1308 }
 0x546   : > { %v1974_v8 = vpop.eup %1973  ;;  %v1310_v9 = vsub.f32 %v1306_v63, %v1309_v7 }
 0x547   : > { %v1147_v10 = vsel %vm733_vm2, %v1974_v8, 0.0 }
 0x548   : > { %v1311_v11 = vmul.f32 1.442695, %v1310_v9  ;;  %1148 = vadd.xlane.f32.xlu0 %v1147_v10 }
 0x54a   : > { %1975 = vpow2.f32 %v1311_v11 }
 0x54b   : > { %1977 = vpow2.f32 %v978_v15 }
 0x554   : > { %v1976_v12 = vpop.eup %1975 }
 0x555   : > { %v1313_v13 = vsel %vm733_vm2, %v1976_v12, 0.0  ;;  %v1978_v16 = vpop.eup %1977 }
 0x556   : > { %1314 = vadd.xlane.f32.xlu1 %v1313_v13  ;;  %v980_v17 = vsel %vm733_vm2, %v1978_v16, 0.0 }
 0x55e   : > { %986 = vrot.lane.b32.xlu0 %v2695_v40, %s2279_s27  ;;  %s2759_s27 = scalar_lea.hbm %s2879_s28, %s1714_s9 }
 0x567   : > { %1152 = vrot.lane.b32.xlu1 %v2695_v40, %s2280_s19  ;;  %s1497_s19 = scalar_lea.sflag [#allocation4], %s2619_s29 }
 0x58b   : > { %981 = vadd.xlane.f32.xlu1 %v980_v17 }
 0x59c   : > { %1318 = vrot.lane.b32.xlu1 %v2695_v40, %s2281_s14  ;;  %s2187_s14 = scalar_lea.vmem %s2761_s16, 128 }
 0x59d   : > { %p2188_p13 = scmp.ne.s32.totalorder %s2761_s16, %s2187_s14  ;;  %p2195_p2 = scmp.lt.s32.totalorder %s2193_s21, %s2187_s14 }
 0x59f   : > { %p2189_p1 = pnand %p2188_p13, %p2880_p11  ;;  %p2196_p4 = por %p2195_p2, %p2194_p5 }
 0x5a1   : > { %p2190_p6 = pneg %p2189_p1 }
 0x5a3   : > { %p2197_p10 = pnand %p2196_p4, %p2190_p6 }
 0x5d5   : > { %v1149_v18 = vpop.xlane.xlu0 %1148 }
 0x5d9   : > { %v987_v19 = vpop.permute.xlu0 %986 }
 0x5da   : > { %1802 = vmatpush3.msra.mxu1 %v987_v19 }
 0x5db   : > { %1811 = vmatprep.subr.mxu1 %v2278_v1 }
 0x5e3   : > { %v1315_v20 = vpop.xlane.xlu1 %1314 }
 0x5e7   : > { %v1153_v21 = vpop.permute.xlu1 %1152 }
 0x618   : > { %v982_v22 = vpop.xlane.xlu1 %981 }
 0x619   : > { %1979 = vrcp.f32 %v982_v22 }
 0x61a   : > { %1981 = vrcp.f32 %v1149_v18 }
 0x61b   : > { %1983 = vrcp.f32 %v1315_v20 }
 0x61c   : > { %v1319_v28 = vpop.permute.xlu1 %1318 }
 0x623   : > { %v1980_v23 = vpop.eup %1979 }
 0x624   : > { %v984_v24 = vmul.f32 %v1980_v23, %v1978_v16  ;;  %v1982_v25 = vpop.eup %1981 }
 0x625   : > { %v1151_v26 = vmul.f32 %v1982_v25, %v1974_v8  ;;  %v1984_v27 = vpop.eup %1983 }
 0x626   : > { %1804 = vmatmul.mubr.msk.f32.vlgmr.msra.gmra.mrb[8].mxu1 %vm733_vm2, %v984_v24  ;;  %v1317_v29 = vmul.f32 %v1984_v27, %v1976_v12 }
 0x627   : > { %1812 = vmatpush3.msra.mxu1 %v1153_v21  ;;  %1813 = vmatprep.mubr.msk.f32.mxu1 %vm2277_vm0, %v2278_v1 }
 0x628   : > { %1821 = vmatprep.subr.mxu1 %v2278_v1 }
 0x62a   : > { %1814 = vmatmul.mubr.msk.f32.vlgmr.msra.gmra.mrb[10].mxu1 %vm733_vm2, %v1151_v26 }
 0x62b   : > { %1822 = vmatpush3.msra.mxu1 %v1319_v28  ;;  %1823 = vmatprep.mubr.msk.f32.mxu1 %vm2277_vm0, %v2278_v1 }
 0x62e   : > { %1824 = vmatmul.mubr.msk.f32.vlgmr.msra.gmra.mrb[12].mxu1 %vm733_vm2, %v1317_v29 }
 0x6f9   : > { %v1058_v36 = vpop.f32.mrb[8].mxu1 }
 0x6fa   : > { %1395 = vrot.lane.b32.xlu0 %v1058_v36, %s2282_s13  ;;  %v1805_v37 = vpop.f32.mrb[9].mxu1 }
 0x6fd   : > { %v1224_v38 = vpop.f32.mrb[10].mxu1 }
 0x6fe   : > { %1399 = vrot.lane.b32.xlu1 %v1224_v38, %s2283_s12  ;;  %v1815_v1 = vpop.f32.mrb[11].mxu1 }
 0x701   : > { %v1390_v39 = vpop.f32.mrb[12].mxu1 }
 0x702   : > { %1403 = vrot.lane.b32.xlu0 %v1390_v39, %s2284_s24  ;;  %v1825_v40 = vpop.f32.mrb[13].mxu1 }
 0x76c   : > { %v1396_v41 = vpop.permute.xlu0 %1395 }
 0x76d   : > { %v1406_v42 = vsel %vm733_vm2, %v2721_v57, %v1396_v41 }
 0x770   : > { %v1400_v0 = vpop.permute.xlu1 %1399 }
 0x771   : > { %v1408_v43 = vsel %vm1407_vm4, %v1406_v42, %v1400_v0 }
 0x774   : > { %v1404_v44 = vpop.permute.xlu0 %1403 }
 0x775   : > { %v1410_v45 = vsel %vm1409_vm5, %v1408_v43, %v1404_v44 }
 0x776   : > { %1835 = vmatmul.mubr.msk.f32.vlgmr.msra.gmra.mrb[8].mxu0 %vm499_vm1, %v1410_v45 }
 0x849   : > { %v1491_v47 = vpop.f32.mrb[8].mxu0 }
 0x84a   : > { %v1492_v48 = vadd.f32 %v1711_v46, %v1491_v47  ;;  %v1836_v49 = vpop.f32.mrb[9].mxu0 }
 0x84c   : > { %1495 = vst.msk [vmem:[%s489_s25] sm:$0xff] %vm499_vm1, %v1492_v48 }
 0x84d   : > { %2200 = shalt.err (!%p2197_p10)
}
 0x84e   : > { %s2201_s29 = scalar_lea.hbm %s2759_s27, 128  ;;  %s2205_s6 = scalar_lea.hbm %s2879_s28, 256 }
 0x84f   : > { %p2202_p3 = scmp.ne.s32.totalorder %s2759_s27, %s2201_s29  ;;  %p2206_p0 = scmp.lt.u32.totalorder %s2759_s27, %s2879_s28 }
 0x850   : > { %p2207_p7 = scmp.lt.u32.totalorder %s2205_s6, %s2201_s29  ;;  %p2209_p13 = scmp.lt.u32.totalorder %s2201_s29, %s2759_s27 }
 0x851   : > { %p2203_p8 = pnand %p2202_p3, %p2880_p11 }
 0x852   : > { %p2208_p9 = por %p2207_p7, %p2206_p0 }
 0x853   : > { %p2204_p12 = pneg %p2203_p8 }
 0x854   : > { %p2210_p1 = por %p2209_p13, %p2208_p9 }
 0x856   : > { %p2211_p6 = pnand %p2210_p1, %p2204_p12 }
 0x858   : > { %2214 = shalt.err (!%p2211_p6)
}
 0x859   : > { %1883 = dma.vmem_to_hbm [thread:$0]  (%p2880_p11), %s2761_s16, 128, %s2759_s27, %s1497_s19  }
 0x85a PF: > { %s2881_s12 = sld [smem:[#allocation20_spill]]  ;;  %s2882_s24 = sld [smem:[#allocation25_spill]] }
 0x85b   : > { %s2883_s20 = sld [smem:[#allocation21_spill]] }
 0x860   : > { %s1522_s30 = sand.u32 1, %s2881_s12   ;;  %p2884_p5 = scmp.ne.s32.totalorder %s2882_s24, 0 }
 0x861   : > { %p2885_p2 = scmp.ge.s32.totalorder %s2883_s20, 2  ;;  %s1523_s26 = scalar_lea.sflag [#allocation4], %s1522_s30 }
 0x863   : > { %p1909_p4 = pnand %p2885_p2, %p2884_p5 }
 0x865   : > { %2248 = dma.done.wait (!%p1909_p4), %s1523_s26, 128  }
 0x866   : > { %2250 = vsyncadd (!%p1909_p4), %s1523_s26, 4294967168  ;;  %s2886_s12 = sld [smem:[#allocation22_spill]]  ;;  %s2887_s9 = sld [smem:[#allocation23_spill]] }
 0x867   : > { %s2888_s30 = smov %s2257_s10  ;;  %s2889_s10 = smov %s2261_s11 }
 0x86c   : > { %p27_p10 = scmp.ge.s32.totalorder %s2886_s12, 4   ;;  %s2890_s11 = smov %s2887_s9 }
 0x86e   :  { %29 = sbr.rel (!%p27_p10) target bundleno = 15 (0xf), region = 144 }
 0x875   :  { %1528 = vsyncpa [#allocation3], 1 }
 0x876   :  { %1530 = vsyncpa [#allocation3 + $0x1], 1 }
 0x877   :  { %1531 = vsyncpa [#allocation6], 1 }
 0x878   :  { %1533 = vsyncpa [#allocation6 + $0x1], 1 }
 0x879   :  { %1534 = vsyncpa [#allocation9], 1 }
 0x87a   :  { %1535 = vsyncpa [#allocation12], 1 }
 0x87b   :  { %1536 = vsyncpa [#allocation4], 1 }
 0x87c   :  { %1538 = vsyncpa [#allocation4 + $0x1], 1 }

</bundles_post_ra>
